<compile_context>
chip_gen: v7x
topology: tpu7x:2x2x1
jax: 0.10.0
libtpu: 0.0.40
codegen_flags: <defaults>
</compile_context>

<pallas_src>
import functools

import jax
import jax.numpy as jnp
from jax.experimental import pallas as pl
from jax.experimental.pallas import tpu as pltpu


def cnn_kernel(tok_ref, emb_ref, wc_ref, bc_ref, wl_ref, bl_ref, o_ref, *,
               seq_len, compute_dtype):
    # tok_ref: (TB*T, 1) int32   token ids of this batch tile (batch-major, time-minor)
    # emb_ref: (V, D)            embedding table (compute_dtype)
    # wc_ref : (D, 3*P)          conv filter taps, column k*P + p == conv_w[p, 0, k, :]
    # bc_ref : (1, P)            conv bias
    # wl_ref : (P, O)            linear weight (transposed)
    # bl_ref : (1, O)            linear bias
    # o_ref  : (TB, O)
    T = seq_len
    tbT = tok_ref.shape[0]
    TB = tbT // T
    V = emb_ref.shape[0]
    P = bc_ref.shape[1]

    # ---- fused embedding lookup: one-hot built in-register, one MXU matmul ----
    # TODO(synk): for large vocabularies replace the one-hot matmul with a DMA
    # gather (scalar-prefetched tokens + per-row async copies).
    tok = tok_ref[...]                                            # (TB*T, 1) int32
    vocab_iota = jax.lax.broadcasted_iota(jnp.int32, (tbT, V), 1)
    onehot = (tok == vocab_iota).astype(compute_dtype)            # (TB*T, V)
    emb = jnp.dot(onehot, emb_ref[...],
                  preferred_element_type=jnp.float32)             # (TB*T, D) f32

    # ---- all three conv taps in ONE flat matmul over flattened (batch*time) ----
    z = jnp.dot(emb.astype(compute_dtype), wc_ref[...],
                preferred_element_type=jnp.float32)               # (TB*T, 3P) f32
    z3 = z.reshape(TB, T, 3 * P)
    z0 = z3[:, :, 0 * P:1 * P]    # tap k=0 (uses x[t-1])
    z1 = z3[:, :, 1 * P:2 * P]    # tap k=1 (uses x[t])
    z2 = z3[:, :, 2 * P:3 * P]    # tap k=2 (uses x[t+1])

    # padding=(1,0): shift the small tap outputs; boundary contributions are zero.
    zrow = jnp.zeros((TB, 1, P), jnp.float32)
    conv = (z1
            + jnp.concatenate([zrow, z0[:, :T - 1, :]], axis=1)    # z0[t-1]
            + jnp.concatenate([z2[:, 1:, :], zrow], axis=1))       # z2[t+1]

    # Bias + ReLU after the time max-pool (equivalent; VPU work on (TB,P) only).
    pooled = jnp.maximum(jnp.max(conv, axis=1) + bc_ref[...], 0.0)  # (TB, P)

    out = jnp.dot(pooled, wl_ref[...],
                  preferred_element_type=jnp.float32) + bl_ref[...]
    o_ref[...] = out.astype(o_ref.dtype)


def cnn_forward(tokens, emb_table, conv_w, conv_b, lin_w, lin_b,
                compute_dtype=jnp.float32):
    """tokens: (B, T) int32. Params in PyTorch shapes:
       emb_table (V, D), conv_w (P, 1, 3, D), conv_b (P,), lin_w (O, P), lin_b (O,)."""
    B, T = tokens.shape
    V, D = emb_table.shape
    P = conv_w.shape[0]
    O = lin_w.shape[0]

    # Batch tile: whole batch when small; otherwise a multiple of 8 that divides B.
    # TODO(synk): re-derive the cap from the 64 MiB v7x VMEM budget at very large T/D.
    if B <= 8 or B % 8 != 0:
        tb = B
    else:
        tb = 8
        for cand in (128, 64, 32, 16, 8):
            if B % cand == 0:
                tb = cand
                break
    grid = (B // tb,)

    # Parameter re-layout (weight plumbing only, done once outside the hot path).
    wc = jnp.transpose(conv_w[:, 0, :, :], (1, 2, 0))      # (3, D, P)
    wc = jnp.transpose(wc, (1, 0, 2)).reshape(D, 3 * P)    # (D, 3P), col = k*P + p
    wc = wc.astype(compute_dtype)
    emb = emb_table.astype(compute_dtype)
    bc = conv_b.reshape(1, P).astype(jnp.float32)
    wl = lin_w.T.astype(jnp.float32)                       # (P, O)
    bl = lin_b.reshape(1, O).astype(jnp.float32)

    # Tokens only (int32) cross the kernel boundary; the (B,T,D) activation never
    # touches HBM.
    tok2 = tokens.astype(jnp.int32).reshape(B * T, 1)

    kernel = functools.partial(cnn_kernel, seq_len=T, compute_dtype=compute_dtype)

    itemsize = jnp.dtype(compute_dtype).itemsize
    flops = 2 * B * T * (V * D + D * 3 * P) + 2 * B * P * O
    bytes_accessed = (tok2.size * 4
                      + (V * D + D * 3 * P) * itemsize
                      + (P + P * O + O + B * O) * 4)

    return pl.pallas_call(
        kernel,
        out_shape=jax.ShapeDtypeStruct((B, O), jnp.float32),
        grid_spec=pltpu.PrefetchScalarGridSpec(
            num_scalar_prefetch=0,
            grid=grid,
            in_specs=[
                pl.BlockSpec((tb * T, 1), lambda b: (b, 0)),   # tokens tile
                pl.BlockSpec((V, D), lambda b: (0, 0)),        # embedding table (resident)
                pl.BlockSpec((D, 3 * P), lambda b: (0, 0)),    # conv taps
                pl.BlockSpec((1, P), lambda b: (0, 0)),        # conv bias
                pl.BlockSpec((P, O), lambda b: (0, 0)),        # linear weight
                pl.BlockSpec((1, O), lambda b: (0, 0)),        # linear bias
            ],
            out_specs=pl.BlockSpec((tb, O), lambda b: (b, 0)),
        ),
        compiler_params=pltpu.CompilerParams(
            dimension_semantics=("parallel",),                 # 2 TCs on v7x
            vmem_limit_bytes=32 * 1024 * 1024,
        ),
        cost_estimate=pl.CostEstimate(flops=flops, transcendentals=0,
                                      bytes_accessed=bytes_accessed),
    )(tok2, emb, wc, bc, wl, bl)


def cnn_reference(tokens, emb_table, conv_w, conv_b, lin_w, lin_b):
    """Pure-JAX reference mirroring the PyTorch forward."""
    emb = emb_table[tokens]                                # (B, T, D)
    x_pad = jnp.pad(emb, ((0, 0), (1, 1), (0, 0)))
    T = tokens.shape[1]
    wc = jnp.transpose(conv_w[:, 0, :, :], (1, 2, 0))      # (3, D, P)
    conv = sum(jnp.einsum('btd,dp->btp', x_pad[:, k:k + T, :], wc[k]) for k in range(3))
    conv = conv + conv_b[None, None, :]
    h = jnp.maximum(conv, 0.0)
    pooled = jnp.max(h, axis=1)
    return pooled @ lin_w.T + lin_b


if __name__ == "__main__":
    # Small, deterministic setup consistent with the module.
    B, T = 2, 8
    input_size = 32       # D (embedding dim / conv kernel width)
    vocab_size = 50
    pooling_size = 16     # P (conv out channels)
    output_size = 4

    key = jax.random.PRNGKey(0)
    k_emb, k_cw, k_cb, k_lw, k_lb, k_tok = jax.random.split(key, 6)

    emb_table = 0.1 * jax.random.normal(k_emb, (vocab_size, input_size), jnp.float32)
    emb_table = emb_table.at[0].set(0.0)   # padding_idx=0

    conv_w = 0.1 * jax.random.normal(k_cw, (pooling_size, 1, 3, input_size), jnp.float32)
    conv_b = 0.1 * jax.random.normal(k_cb, (pooling_size,), jnp.float32)
    lin_w = 0.1 * jax.random.normal(k_lw, (output_size, pooling_size), jnp.float32)
    lin_b = 0.1 * jax.random.normal(k_lb, (output_size,), jnp.float32)

    tokens = jax.random.randint(k_tok, (B, T), 0, vocab_size, jnp.int32)

    ref = cnn_reference(tokens, emb_table, conv_w, conv_b, lin_w, lin_b)

    # f32 path (exact semantics)
    out = cnn_forward(tokens, emb_table, conv_w, conv_b, lin_w, lin_b)
    out = jax.block_until_ready(out)
    assert out.shape == (B, output_size)
    assert jnp.allclose(out, ref, atol=2e-5, rtol=2e-5), "f32 mismatch vs reference"

    # bf16 MXU-input path (v6e/v7x throughput lever), f32 accumulation.
    out_bf16 = jax.block_until_ready(
        cnn_forward(tokens, emb_table, conv_w, conv_b, lin_w, lin_b,
                    compute_dtype=jnp.bfloat16))
    assert out_bf16.shape == (B, output_size)
    assert jnp.allclose(out_bf16, ref, atol=5e-2, rtol=5e-2), "bf16 mismatch vs reference"

    print("KERNEL_OK")
</pallas_src>

<mosaic_0001>
module attributes {stable_mosaic.version = 11 : i64} {
  func.func @cnn_kernel(%arg0: i32, %arg1: memref<16x1xi32, #tpu.memory_space<vmem>>, %arg2: memref<50x32xf32, #tpu.memory_space<vmem>>, %arg3: memref<32x48xf32, #tpu.memory_space<vmem>>, %arg4: memref<1x16xf32, #tpu.memory_space<vmem>>, %arg5: memref<16x4xf32, #tpu.memory_space<vmem>>, %arg6: memref<1x4xf32, #tpu.memory_space<vmem>>, %arg7: memref<2x4xf32, #tpu.memory_space<vmem>>) attributes {dimension_semantics = [#tpu.dimension_semantics<parallel>], iteration_bounds = array<i64: 1>, scalar_prefetch = 0 : i64, scratch_operands = 0 : i64, tpu.core_type = #tpu.core_type<tc>, window_params = [{transform_indices = @transform_0, window_bounds = array<i64: 16, 1>}, {pipeline_mode = #tpu.pipeline_mode<synchronous>, transform_indices = @transform_1, window_bounds = array<i64: 50, 32>}, {pipeline_mode = #tpu.pipeline_mode<synchronous>, transform_indices = @transform_2, window_bounds = array<i64: 32, 48>}, {pipeline_mode = #tpu.pipeline_mode<synchronous>, transform_indices = @transform_3, window_bounds = array<i64: 1, 16>}, {pipeline_mode = #tpu.pipeline_mode<synchronous>, transform_indices = @transform_4, window_bounds = array<i64: 16, 4>}, {pipeline_mode = #tpu.pipeline_mode<synchronous>, transform_indices = @transform_5, window_bounds = array<i64: 1, 4>}, {transform_indices = @transform_6, window_bounds = array<i64: 2, 4>}]} {
    %c0 = arith.constant 0 : index
    %c0_0 = arith.constant 0 : index
    %0 = vector.load %arg1[%c0, %c0_0] : memref<16x1xi32, #tpu.memory_space<vmem>>, vector<16x1xi32>
    %1 = tpu.iota {dimensions = array<i32: 1>} : vector<16x50xi32>
    %2 = vector.broadcast %0 : vector<16x1xi32> to vector<16x50xi32>
    %3 = arith.cmpi eq, %2, %1 : vector<16x50xi32>
    %4 = arith.extui %3 : vector<16x50xi1> to vector<16x50xi32>
    %5 = arith.sitofp %4 : vector<16x50xi32> to vector<16x50xf32>
    %c0_1 = arith.constant 0 : index
    %c0_2 = arith.constant 0 : index
    %6 = vector.load %arg2[%c0_1, %c0_2] : memref<50x32xf32, #tpu.memory_space<vmem>>, vector<50x32xf32>
    %cst = arith.constant dense<0.000000e+00> : vector<16x32xf32>
    %7 = tpu.matmul %5, %6, %cst {dimension_numbers = #tpu.dot_dimension_numbers<[1], [0], [0], [1], [0, 0, 1, 1], [], []>} : vector<16x50xf32>, vector<50x32xf32>, vector<16x32xf32> -> vector<16x32xf32>
    %c0_3 = arith.constant 0 : index
    %c0_4 = arith.constant 0 : index
    %8 = vector.load %arg3[%c0_3, %c0_4] : memref<32x48xf32, #tpu.memory_space<vmem>>, vector<32x48xf32>
    %cst_5 = arith.constant dense<0.000000e+00> : vector<16x48xf32>
    %9 = tpu.matmul %7, %8, %cst_5 {dimension_numbers = #tpu.dot_dimension_numbers<[1], [0], [0], [1], [0, 0, 1, 1], [], []>} : vector<16x32xf32>, vector<32x48xf32>, vector<16x48xf32> -> vector<16x48xf32>
    %10 = vector.shape_cast %9 : vector<16x48xf32> to vector<2x8x48xf32>
    %11 = vector.extract_strided_slice %10 {offsets = [0, 0, 0], sizes = [2, 8, 16], strides = [1, 1, 1]} : vector<2x8x48xf32> to vector<2x8x16xf32>
    %12 = vector.extract_strided_slice %10 {offsets = [0, 0, 16], sizes = [2, 8, 16], strides = [1, 1, 1]} : vector<2x8x48xf32> to vector<2x8x16xf32>
    %13 = vector.extract_strided_slice %10 {offsets = [0, 0, 32], sizes = [2, 8, 16], strides = [1, 1, 1]} : vector<2x8x48xf32> to vector<2x8x16xf32>
    %cst_6 = arith.constant 0.000000e+00 : f32
    %14 = vector.broadcast %cst_6 : f32 to vector<2x1x16xf32>
    %15 = vector.extract_strided_slice %11 {offsets = [0, 0, 0], sizes = [2, 7, 16], strides = [1, 1, 1]} : vector<2x8x16xf32> to vector<2x7x16xf32>
    %16 = tpu.concatenate %14, %15 in 1 : vector<2x1x16xf32>, vector<2x7x16xf32> -> vector<2x8x16xf32>
    %17 = arith.addf %12, %16 : vector<2x8x16xf32>
    %18 = vector.extract_strided_slice %13 {offsets = [0, 1, 0], sizes = [2, 7, 16], strides = [1, 1, 1]} : vector<2x8x16xf32> to vector<2x7x16xf32>
    %19 = tpu.concatenate %18, %14 in 1 : vector<2x7x16xf32>, vector<2x1x16xf32> -> vector<2x8x16xf32>
    %20 = arith.addf %17, %19 : vector<2x8x16xf32>
    %cst_7 = arith.constant dense<0xFF800000> : vector<2x16xf32>
    %21 = vector.multi_reduction <maximumf>, %20, %cst_7 [1] : vector<2x8x16xf32> to vector<2x16xf32>
    %c0_8 = arith.constant 0 : index
    %c0_9 = arith.constant 0 : index
    %22 = vector.load %arg4[%c0_8, %c0_9] : memref<1x16xf32, #tpu.memory_space<vmem>>, vector<1x16xf32>
    %23 = vector.broadcast %22 : vector<1x16xf32> to vector<2x16xf32>
    %24 = arith.addf %21, %23 : vector<2x16xf32>
    %cst_10 = arith.constant 0.000000e+00 : f32
    %25 = vector.broadcast %cst_10 : f32 to vector<2x16xf32>
    %26 = arith.maximumf %24, %25 : vector<2x16xf32>
    %c0_11 = arith.constant 0 : index
    %c0_12 = arith.constant 0 : index
    %27 = vector.load %arg5[%c0_11, %c0_12] : memref<16x4xf32, #tpu.memory_space<vmem>>, vector<16x4xf32>
    %cst_13 = arith.constant dense<0.000000e+00> : vector<2x4xf32>
    %28 = tpu.matmul %26, %27, %cst_13 {dimension_numbers = #tpu.dot_dimension_numbers<[1], [0], [0], [1], [0, 0, 1, 1], [], []>} : vector<2x16xf32>, vector<16x4xf32>, vector<2x4xf32> -> vector<2x4xf32>
    %c0_14 = arith.constant 0 : index
    %c0_15 = arith.constant 0 : index
    %29 = vector.load %arg6[%c0_14, %c0_15] : memref<1x4xf32, #tpu.memory_space<vmem>>, vector<1x4xf32>
    %30 = vector.broadcast %29 : vector<1x4xf32> to vector<2x4xf32>
    %31 = arith.addf %28, %30 : vector<2x4xf32>
    %c0_16 = arith.constant 0 : index
    %c0_17 = arith.constant 0 : index
    %32 = vector.load %arg7[%c0_16, %c0_17] : memref<2x4xf32, #tpu.memory_space<vmem>>, vector<2x4xf32>
    tpu.vector_store %arg7[%c0_16, %c0_17], %31 {strides = array<i32>} : memref<2x4xf32, #tpu.memory_space<vmem>>, vector<2x4xf32>,
    return
  }
  func.func @transform_0(%arg0: i32) -> (i32, i32) {
    %c0_i32 = arith.constant 0 : i32
    %c0_i32_0 = arith.constant 0 : i32
    return %arg0, %c0_i32 : i32, i32
  }
  func.func @transform_1(%arg0: i32) -> (i32, i32) {
    %c0_i32 = arith.constant 0 : i32
    %c0_i32_0 = arith.constant 0 : i32
    %c0_i32_1 = arith.constant 0 : i32
    return %c0_i32, %c0_i32_0 : i32, i32
  }
  func.func @transform_2(%arg0: i32) -> (i32, i32) {
    %c0_i32 = arith.constant 0 : i32
    %c0_i32_0 = arith.constant 0 : i32
    %c0_i32_1 = arith.constant 0 : i32
    return %c0_i32, %c0_i32_0 : i32, i32
  }
  func.func @transform_3(%arg0: i32) -> (i32, i32) {
    %c0_i32 = arith.constant 0 : i32
    %c0_i32_0 = arith.constant 0 : i32
    %c0_i32_1 = arith.constant 0 : i32
    return %c0_i32, %c0_i32_0 : i32, i32
  }
  func.func @transform_4(%arg0: i32) -> (i32, i32) {
    %c0_i32 = arith.constant 0 : i32
    %c0_i32_0 = arith.constant 0 : i32
    %c0_i32_1 = arith.constant 0 : i32
    return %c0_i32, %c0_i32_0 : i32, i32
  }
  func.func @transform_5(%arg0: i32) -> (i32, i32) {
    %c0_i32 = arith.constant 0 : i32
    %c0_i32_0 = arith.constant 0 : i32
    %c0_i32_1 = arith.constant 0 : i32
    return %c0_i32, %c0_i32_0 : i32, i32
  }
  func.func @transform_6(%arg0: i32) -> (i32, i32) {
    %c0_i32 = arith.constant 0 : i32
    %c0_i32_0 = arith.constant 0 : i32
    return %arg0, %c0_i32 : i32, i32
  }
}

</mosaic_0001>

<bundles_post_ra>
// kernel: tpu_custom_call.1
= control target key start
LH: loop header
LB: loop body
LE: loop exit
PB: predicated region body
PF: predicated region fallthrough
CT: control target
= control target key end

     0   :  { %v506_v2 = vmov 0   ;;  %s616_s0 = inlined_call_operand.vmem [shape: s32[16,1], index: 0, kind: input, shape index: {}]   ;;  %s617_s1 = inlined_call_operand.vmem [shape: f32[50,32], index: 1, kind: input, shape index: {}]   ;;  %s618_s2 = inlined_call_operand.vmem [shape: f32[32,48], index: 2, kind: input, shape index: {}]   ;;  %s619_s3 = inlined_call_operand.vmem [shape: f32[1,16], index: 3, kind: input, shape index: {}]   ;;  %s620_s4 = inlined_call_operand.vmem [shape: f32[16,4], index: 4, kind: input, shape index: {}]   ;;  %s621_s5 = inlined_call_operand.vmem [shape: f32[1,4], index: 5, kind: input, shape index: {}]   ;;  %s622_s6 = inlined_call_operand.hbm [shape: f32[2,4], index: 6, kind: output, shape index: {}]  }
   0x1   :  { %v24_v0 = vld [vmem:[%s616_s0] sm:$0xff]  ;;  %481 = vset.pattern.permute.xlu0 %v506_v2  ;;  %v41_v3 = vld [vmem:[%s617_s1 + $0x8] sm:$0xff]  ;;  %v42_v4 = vld [vmem:[%s617_s1 + $0x10] sm:$0xff] }
   0x2   :  { %v40_v1 = vld [vmem:[%s617_s1] sm:$0xff]  ;;  %v43_v5 = vld [vmem:[%s617_s1 + $0x18] sm:$0xff]  ;;  %29 = vperm.xlu0 %481, %v24_v0  }
   0x3   :  { %v451_v6 = vpack.c.bf16 %v41_v3, %v40_v1  ;;  %v455_v7 = vpack.c.bf16 %v43_v5, %v42_v4 }
   0x4   :  { %11 = vsyncpa [#allocation3], 0  ;;  %v25_v8 = vld [vmem:[%s616_s0 + $0x8] sm:$0xff]  ;;  %v44_v9 = vld [vmem:[%s617_s1 + $0x20] sm:$0xff]  ;;  %vm54_vm0 = vcmask 1041408   ;;  %v26_v19 = vlaneseq  ;;  %vm47_vm1 = vcmask 408576  }
   0x5   :  { %v45_v10 = vld [vmem:[%s617_s1 + $0x28] sm:$0xff]  ;;  %452 = vmatprep.subr.bf16.mxu0 %v451_v6  ;;  %v133_v12 = vld [vmem:[%s618_s2] sm:$0xff]  ;;  %v135_v14 = vld [vmem:[%s618_s2 + $0x10] sm:$0xff]  ;;  %v507_v22 = vmov 0.0   ;;  %vm137_vm4 = vcmask 261120   ;;  %vm242_vm5 = vcmask 1046528  }
   0x6   :  { %454 = vmatpush3.bf16.msra.mxu0 %v451_v6  ;;  %32 = vperm.xlu0 %481, %v25_v8   ;;  %v459_v11 = vpack.c.bf16 %v45_v10, %v44_v9  ;;  %v134_v13 = vld [vmem:[%s618_s2 + $0x8] sm:$0xff]  ;;  %v136_v16 = vld [vmem:[%s618_s2 + $0x18] sm:$0xff]  ;;  %v46_v18 = vld [vmem:[%s617_s1 + $0x30] sm:$0x3]  ;;  %v27_v20 = vand.u32 127, %v26_v19  ;;  %vm225_vm6 = vcmask 1040384  }
   0x7   :  { %456 = vmatprep.subr.bf16.mxu0 %v455_v7  ;;  %v463_v15 = vpack.c.bf16 %v134_v13, %v133_v12  ;;  %v467_v17 = vpack.c.bf16 %v136_v16, %v135_v14  ;;  %s508_s1 = smov 112   ;;  %s509_s2 = smov 16   ;;  %v395_v35 = vld [vmem:[%s619_s3] ss:$0 sm:$0xff]  ;;  %v284_v40 = vld [vmem:[%s620_s4 + $0x8] sm:$0xff]  ;;  %v510_v41 = vmov 0.0|0.0  }
   0x8   :  { %v283_v39 = vld [vmem:[%s620_s4] sm:$0xff]  ;;  %vm511_vm7 = vmmov 0   ;;  %vm255_vm8 = vcmask 261248   ;;  %vm295_vm9 = vcmask 1041409   ;;  %vm299_vm10 = vcmask 130048   ;;  %s512_s28 = smov [#allocation2]  }
   0x9   :  { %464 = vmatprep.subr.bf16.mxu1 %v463_v15  ;;  %v472_v42 = vpack.c.bf16 %v284_v40, %v283_v39  ;;  %v396_v9 = vld [vmem:[%s621_s5] ss:$0 sm:$0xff]  ;;  %s380_s29 = sshll.u32 %s512_s28, 4  ;;  %vm372_vm11 = vcmask 25600   ;;  %s381_s29 = int_to_ptr.vmem [resolvable:$true] %s380_s29 }
   0xa   :  { %458 = vmatpush3.bf16.msra.mxu0 %v455_v7  ;;  %466 = vmatpush3.bf16.msra.mxu1 %v463_v15  ;;  %s482_s30 = scalar_lea.vmem %s381_s29, 32  ;;  %p487_p1 = scmp.lt.s32.totalorder %s381_s29, %s381_s29 }
   0xb   :  { %460 = vmatprep.subr.bf16.mxu0 %v459_v11  ;;  %468 = vmatprep.subr.bf16.mxu1 %v467_v17  ;;  %p483_p0 = scmp.ne.s32.totalorder %s381_s29, %s482_s30  ;;  %p488_p2 = scmp.lt.s32.totalorder %s482_s30, %s482_s30 }
   0xd   :  { %p489_p3 = por %p488_p2, %p487_p1 }
   0xe   :  { %462 = vmatpush3.bf16.msra.mxu0 %v459_v11  ;;  %470 = vmatpush3.bf16.msra.mxu1 %v467_v17 }
   0xf   :  { %428 = vmatprep.subr.msk.mxu0 %vm54_vm0, %v46_v18  ;;  %471 = vmatprep.subr.bf16.mxu1 %v510_v41  ;;  %p490_p4 = pnand %p489_p3, %p483_p0 }
  0x12   :  { %429 = vmatpush3.msk.msra.mxu0 %vm54_vm0, %v46_v18 }
  0x81   :  { %v30_v21 = vpop.permute.xlu0 %29 }
  0x82   :  { %vm34_vm2 = vcmp.eq.s32.totalorder %v30_v21, %v27_v20 }
  0x83   :  { %v388_v23 = vsel %vm34_vm2, 1.0, %v507_v22 }
  0x84   :  { %430 = vmatprep.mubr.msk.f32.mxu0 %vm47_vm1, %v388_v23 }
  0x85   :  { %v33_v24 = vpop.permute.xlu0 %32 }
  0x86   :  { %vm35_vm3 = vcmp.eq.s32.totalorder %v33_v24, %v27_v20 }
  0x87   :  { %v389_v25 = vsel %vm35_vm3, 1.0, %v507_v22 }
  0x88   :  { %431 = vmatmul.mubr.msk.f32.vlgmr.msra.gmra.mrb[0].mxu0 %vm47_vm1, %v389_v25 }
 0x15b   :  { %v432_v26 = vpop.f32.mrb[0].mxu0 }
 0x15c   :  { %v124_v27 = vpop.f32.mrb[1].mxu0 }
 0x15d   :  { %441 = vmatprep.mubr.msk.f32.mxu1 %vm137_vm4, %v124_v27 }
 0x15e   :  { %442 = vmatmul.mubr.msk.f32.vlgmr.msra.gmra.mrb[0].mxu1 %vm137_vm4, %v432_v26 }
 0x15f   :  { %448 = vmatprep.mubr.msk.f32.mxu1 %vm511_vm7, %v507_v22  ;;  %473 = vmatpush3.bf16.msra.mxu1 %v472_v42 }
 0x231   :  { %v443_v28 = vpop.f32.mrb[0].mxu1 }
 0x232   :  { %v239_v29 = vrot.slane %v443_v28, 1  ;;  %v210_v30 = vpop.f32.mrb[1].mxu1  ;;  %v222_v31 = vrot.slane %v443_v28, 7 }
 0x233   :  { %v221_v32 = vrot.slane %v210_v30, 7  ;;  %v238_v36 = vrot.slane %v210_v30, 1 }
 0x234   :  { %v244_v33 = vsel %vm242_vm5, %v239_v29, 0.0  ;;  %v227_v34 = vsel %vm225_vm6, 0.0, %v222_v31 }
 0x235   :  { %249 = vrot.lane.b32.xlu0 %v244_v33, %s508_s1  ;;  %232 = vrot.lane.b32.xlu1 %v227_v34, %s509_s2  ;;  %v226_v37 = vsel %vm225_vm6, 0.0, %v221_v32  ;;  %v243_v38 = vsel %vm242_vm5, %v238_v36, 0.0 }
 0x239   :  { %230 = vrot.lane.b32.xlu1 %v226_v37, %s509_s2  ;;  %276 = vrot.lane.b32.xlu0 %v395_v35, %s509_s2 }
 0x23d   :  { %247 = vrot.lane.b32.xlu1 %v243_v38, %s508_s1 }
 0x2a7   :  { %v233_v43 = vpop.permute.xlu1 %232  ;;  %v250_v45 = vpop.permute.xlu0 %249 }
 0x2a8   :  { %v237_v44 = vadd.f32 %v443_v28, %v233_v43 }
 0x2aa   :  { %v254_v46 = vadd.f32 %v250_v45, %v237_v44 }
 0x2ab   :  { %v231_v47 = vpop.permute.xlu1 %230  ;;  %v277_v60 = vpop.permute.xlu0 %276 }
 0x2ac   :  { %v263_v48 = vsel %vm255_vm8, %v254_v46, -inf  ;;  %v236_v50 = vadd.f32 %v231_v47, %v210_v30 }
 0x2ad   :  { %v264_v49 = vrot.slane %v263_v48, 4 }
 0x2af   :  { %v265_v51 = vmax.f32 %v263_v48, %v264_v49  ;;  %v248_v52 = vpop.permute.xlu1 %247 }
 0x2b0   :  { %v253_v53 = vadd.f32 %v248_v52, %v236_v50 }
 0x2b1   :  { %v266_v54 = vrot.slane %v265_v51, 2 }
 0x2b2   :  { %v256_v55 = vsel %vm255_vm8, %v253_v53, -inf }
 0x2b3   :  { %v257_v56 = vrot.slane %v256_v55, 4  ;;  %v267_v57 = vmax.f32 %v265_v51, %v266_v54 }
 0x2b5   :  { %v258_v58 = vmax.f32 %v256_v55, %v257_v56  ;;  %v268_v59 = vrot.slane %v267_v57, 1 }
 0x2b7   :  { %v259_v61 = vrot.slane %v258_v58, 2  ;;  %v269_v62 = vmax.f32 %v267_v57, %v268_v59 }
 0x2b9   :  { %v260_v63 = vmax.f32 %v258_v58, %v259_v61  ;;  %v280_v0 = vadd.f32 %v277_v60, %v269_v62 }
 0x2bb   :  { %v261_v1 = vrot.slane %v260_v63, 1  ;;  %v282_v3 = vmax.f32 %v280_v0, 0.0 }
 0x2bd   :  { %v262_v2 = vmax.f32 %v260_v63, %v261_v1  ;;  %v294_v6 = vrot.slane %v282_v3, 7 }
 0x2bf   :  { %v279_v4 = vadd.f32 %v277_v60, %v262_v2 }
 0x2c1   :  { %v281_v5 = vmax.f32 %v279_v4, 0.0 }
 0x2c3   :  { %v296_v7 = vsel %vm295_vm9, %v294_v6, %v281_v5 }
 0x2c4   :  { %297 = vrot.lane.b32.xlu1 %v296_v7, %s508_s1 }
 0x336   :  { %v298_v8 = vpop.permute.xlu1 %297 }
 0x337   :  { %449 = vmatmul.mubr.msk.f32.vlgmr.msra.gmra.mrb[2].mxu1 %vm299_vm10, %v298_v8 }
 0x40a   :  { %v368_v10 = vpop.f32.mrb[2].mxu1 }
 0x40b   :  { %v369_v11 = vadd.f32 %v396_v9, %v368_v10  ;;  %v450_v12 = vpop.f32.mrb[3].mxu1 }
 0x40d   :  { %373 = vst.msk [vmem:[#allocation2] sm:$0x3] %vm372_vm11, %v369_v11 }
 0x40e   :  { %493 = shalt.err (!%p490_p4)
}
 0x40f   :  { %s494_s9 = scalar_lea.hbm %s622_s6, 32 }
 0x410   :  { %p495_p5 = scmp.ne.s32.totalorder %s622_s6, %s494_s9  ;;  %p498_p6 = scmp.lt.u32.totalorder %s494_s9, %s622_s6 }
 0x412   :  { %p500_p7 = pnand %p498_p6, %p495_p5 }
 0x414   :  { %503 = shalt.err (!%p500_p7)
}
 0x415   :  { %383 = dma.vmem_to_hbm [thread:$0]  %s381_s29, 32, %s622_s6, [#allocation3]  }
 0x416   :  { %504 = dma.done.wait [#allocation3], 32  }
 0x417   :  { %505 = vsyncadd [#allocation3], 4294967264 }
 0x418   :  { %387 = vsyncpa [#allocation3], 1 }

</bundles_post_ra>
